<compile_context>
chip_gen: v7x
topology: tpu7x:2x2x1
jax: 0.10.0
libtpu: 0.0.40
codegen_flags: <defaults>
</compile_context>

<pallas_src>
import functools

import jax
import jax.numpy as jnp
import numpy as np
from jax.experimental import pallas as pl
from jax.experimental.pallas import tpu as pltpu


_MODES = {'n': 'nearest', 'l': 'linear', 'b': 'bilinear', 't': 'trilinear'}


def _linear_interp_matrix(out_size: int, in_size: int) -> jnp.ndarray:
    """align_corners=True linear interpolation matrix of shape (out_size, in_size)."""
    if out_size == 1 or in_size == 1:
        w = np.zeros((out_size, in_size), dtype=np.float32)
        w[:, 0] = 1.0
        return jnp.asarray(w)
    out_idx = np.arange(out_size, dtype=np.float64)
    src = out_idx * (in_size - 1) / (out_size - 1)
    i0 = np.clip(np.floor(src).astype(np.int64), 0, in_size - 1)
    i1 = np.clip(i0 + 1, 0, in_size - 1)
    frac = src - i0
    w = np.zeros((out_size, in_size), dtype=np.float64)
    w[np.arange(out_size), i0] += 1.0 - frac
    w[np.arange(out_size), i1] += frac
    return jnp.asarray(w, dtype=jnp.float32)


def _nearest_interp_matrix(out_size: int, in_size: int) -> jnp.ndarray:
    """PyTorch 'nearest' (src = floor(dst * in/out)) as a one-hot matrix."""
    src = np.floor(np.arange(out_size, dtype=np.float64) * (in_size / out_size))
    src = np.clip(src.astype(np.int64), 0, in_size - 1)
    w = np.zeros((out_size, in_size), dtype=np.float32)
    w[np.arange(out_size), src] = 1.0
    return jnp.asarray(w)


def _pad8(n):
    return -(-n // 8) * 8


def _pad128(n):
    return -(-n // 128) * 128


def _tile_f32_bytes(rows, cols):
    return _pad8(rows) * _pad128(cols) * 4


def _step_vmem_bytes(bc, th, h_in, w_in, w_out, fold_w):
    """Conservative per-grid-step VMEM footprint (fp32, (8,128)-padded)."""
    b = 2 * bc * _tile_f32_bytes(h_in, w_in)        # x block (double-buffered)
    b += 2 * _tile_f32_bytes(th, h_in)              # W_h block (double-buffered)
    b += 2 * _tile_f32_bytes(w_in, w_out)           # W_w^T block (double-buffered)
    b += 2 * bc * _tile_f32_bytes(th, w_out)        # output block (double-buffered)
    b += bc * _tile_f32_bytes(h_in, w_in)           # x cast to fp32
    b += bc * _tile_f32_bytes(th, h_in)             # broadcast row weights
    b += bc * _tile_f32_bytes(th, w_in)             # H-interp intermediate
    b += bc * _tile_f32_bytes(th, w_out)            # result before output cast
    if not fold_w:
        b += bc * _tile_f32_bytes(w_in, w_out)      # broadcast column weights
    return b


def _choose_blocks(n_img, h_in, w_in, h_out, w_out,
                   budget_bytes=20 * 1024 * 1024):
    """Pick (channels per step, output rows per step)."""
    foot = functools.partial(_step_vmem_bytes, h_in=h_in, w_in=w_in,
                             w_out=w_out, fold_w=False)
    # Preferred: full-height blocks, as many (n, c) images per step as fit.
    if foot(1, h_out) <= budget_bytes:
        fixed = foot(0, h_out)
        per_chan = max(foot(1, h_out) - fixed, 1)
        cap = max(1, int((budget_bytes - fixed) // per_chan))
        if n_img >= 2:
            cap = min(cap, (n_img + 1) // 2)    # keep >= 2 outer steps (megacore)
        bc = 1
        for d in range(1, min(cap, n_img) + 1):  # largest divisor -> uniform blocks
            if n_img % d == 0:
                bc = d
        return bc, h_out
    # Very large image: one image per step, chunk the output rows.
    fixed = foot(1, 0)
    per_8rows = max(foot(1, 8) - fixed, 1)
    th = max(8, 8 * int((budget_bytes - fixed) // per_8rows))
    if th >= h_out:
        th = h_out
    return 1, th


def _resize_kernel(x_ref, wh_ref, wwt_ref, o_ref, *, fold_w):
    # x_ref:   (Bc, H_in, W_in)  block of (n, c) images
    # wh_ref:  (Th, H_in)        chunk of the row-interpolation matrix
    # wwt_ref: (W_in, W_out)     column-interpolation matrix (transposed)
    # o_ref:   (Bc, Th, W_out)
    bc, _, w_in = x_ref.shape
    th, h_in = wh_ref.shape
    w_out = wwt_ref.shape[1]

    x3 = x_ref[...].astype(jnp.float32)
    wh = wh_ref[...]
    wwt = wwt_ref[...]

    # Row (H) interpolation first so only the rows of this output chunk are
    # computed.  Batched matmul over the Bc channels.
    wh_b = jnp.broadcast_to(wh, (bc, th, h_in))
    t = jnp.einsum('boh,bhw->bow', wh_b, x3,
                   preferred_element_type=jnp.float32)           # (Bc, Th, W_in)

    if fold_w:
        # Fold channels*rows into the M dimension of one MXU matmul.
        y = jnp.dot(t.reshape(bc * th, w_in), wwt,
                    preferred_element_type=jnp.float32)          # (Bc*Th, W_out)
        y = y.reshape(bc, th, w_out)
    else:
        # Fold reshape would not be a layout no-op: keep it batched.
        wwt_b = jnp.broadcast_to(wwt, (bc, w_in, w_out))
        y = jnp.einsum('bow,bwv->bov', t, wwt_b,
                       preferred_element_type=jnp.float32)       # (Bc, Th, W_out)

    o_ref[...] = y.astype(o_ref.dtype)


@functools.partial(jax.jit, static_argnames=("mode", "scale_factor", "shape",
                                              "block_channels", "block_h"))
def interpolate(x: jnp.ndarray, *, mode='b', scale_factor=None, shape=None,
                block_channels=None, block_h=None) -> jnp.ndarray:
    """Pallas equivalent of Interpolate(mode=..., ...).forward for NCHW input."""
    mode = _MODES.get(mode, mode)
    if x.ndim != 4 or mode not in ('nearest', 'bilinear'):
        # TODO(synk): 'linear' (3-D) / 'trilinear' (5-D) modes not implemented.
        raise NotImplementedError(f"mode={mode!r} with ndim={x.ndim} not supported")

    N, C, H_in, W_in = x.shape
    if shape is not None:
        H_out, W_out = shape
    else:
        H_out, W_out = int(H_in * scale_factor), int(W_in * scale_factor)

    if mode == 'bilinear':
        w_h = _linear_interp_matrix(H_out, H_in)            # (H_out, H_in)
        w_w_t = _linear_interp_matrix(W_out, W_in).T        # (W_in, W_out)
    else:  # nearest
        w_h = _nearest_interp_matrix(H_out, H_in)
        w_w_t = _nearest_interp_matrix(W_out, W_in).T

    n_img = N * C
    x_flat = x.reshape(n_img, H_in, W_in)

    bc, th = _choose_blocks(n_img, H_in, W_in, H_out, W_out)
    if block_channels is not None:
        bc = int(block_channels)
    if block_h is not None:
        th = int(block_h)
    grid = (pl.cdiv(n_img, bc), pl.cdiv(H_out, th))
    # Folding (Bc, Th, W_in) -> (Bc*Th, W_in) is a layout no-op iff Th % 8 == 0
    # (or Bc == 1); otherwise use the batched fallback.
    fold_w = (bc == 1) or (th % 8 == 0)

    itemsize = int(jnp.dtype(x.dtype).itemsize)
    flops = int(2 * n_img * H_out * (H_in * W_in + W_in * W_out))
    bytes_accessed = int(n_img * (H_in * W_in + H_out * W_out) * itemsize
                         + 4 * (H_out * H_in + W_in * W_out))

    out_flat = pl.pallas_call(
        functools.partial(_resize_kernel, fold_w=fold_w),
        out_shape=jax.ShapeDtypeStruct((n_img, H_out, W_out), x.dtype),
        grid_spec=pltpu.PrefetchScalarGridSpec(
            num_scalar_prefetch=0,
            grid=grid,
            in_specs=[
                pl.BlockSpec((bc, H_in, W_in), lambda i, j: (i, 0, 0)),
                pl.BlockSpec((th, H_in), lambda i, j: (j, 0)),
                pl.BlockSpec((W_in, W_out), lambda i, j: (0, 0)),
            ],
            out_specs=pl.BlockSpec((bc, th, W_out), lambda i, j: (i, j, 0)),
        ),
        compiler_params=pltpu.CompilerParams(
            # Outer (channel-block) axis feeds both v7x cores; inner H-chunk
            # axis stays sequential so the x block remains resident across it.
            dimension_semantics=("parallel", "arbitrary"),
            vmem_limit_bytes=48 * 1024 * 1024,   # > v5e 16 MiB default, < v7x 64 MiB physical
        ),
        cost_estimate=pl.CostEstimate(
            flops=flops, transcendentals=0, bytes_accessed=bytes_accessed),
    )(x_flat, w_h, w_w_t)

    return out_flat.reshape(N, C, H_out, W_out)


def _reference_bilinear(x, *, scale_factor=None, shape=None):
    """Pure-JAX reference (matches F.interpolate bilinear, align_corners=True)."""
    N, C, H_in, W_in = x.shape
    if shape is not None:
        H_out, W_out = shape
    else:
        H_out, W_out = int(H_in * scale_factor), int(W_in * scale_factor)
    w_h = _linear_interp_matrix(H_out, H_in)
    w_w = _linear_interp_matrix(W_out, W_in)
    return jnp.einsum("oh,nchw,pw->ncop", w_h, x, w_w)


def _reference_nearest(x, *, scale_factor=None, shape=None):
    """Independent gather-based reference (matches F.interpolate 'nearest')."""
    N, C, H_in, W_in = x.shape
    if shape is not None:
        H_out, W_out = shape
    else:
        H_out, W_out = int(H_in * scale_factor), int(W_in * scale_factor)
    rows = np.clip(np.floor(np.arange(H_out) * (H_in / H_out)).astype(np.int64),
                   0, H_in - 1)
    cols = np.clip(np.floor(np.arange(W_out) * (W_in / W_out)).astype(np.int64),
                   0, W_in - 1)
    return x[:, :, rows][:, :, :, cols]


if __name__ == "__main__":
    key = jax.random.PRNGKey(0)

    # 1) Module default: mode='b' (bilinear, align_corners=True), scale_factor=2.
    N, C, H, W = 2, 4, 16, 16
    x = jax.random.normal(key, (N, C, H, W), dtype=jnp.float32)
    out = jax.block_until_ready(interpolate(x, mode='b', scale_factor=2))
    assert out.shape == (N, C, 2 * H, 2 * W), out.shape
    ref = jax.block_until_ready(_reference_bilinear(x, scale_factor=2))
    np.testing.assert_allclose(np.asarray(out), np.asarray(ref), rtol=1e-4, atol=1e-4)

    # 2) `shape=` argument with non-(8,128)-aligned sizes.
    x2 = jax.random.normal(jax.random.PRNGKey(0), (1, 3, 7, 9), dtype=jnp.float32)
    out2 = jax.block_until_ready(interpolate(x2, mode='bilinear', shape=(13, 20)))
    assert out2.shape == (1, 3, 13, 20), out2.shape
    ref2 = jax.block_until_ready(_reference_bilinear(x2, shape=(13, 20)))
    np.testing.assert_allclose(np.asarray(out2), np.asarray(ref2), rtol=1e-4, atol=1e-4)

    # 3) Nearest mode ('n'), non-integer scale.
    x3 = jax.random.normal(jax.random.PRNGKey(0), (2, 3, 10, 12), dtype=jnp.float32)
    out3 = jax.block_until_ready(interpolate(x3, mode='n', shape=(17, 30)))
    assert out3.shape == (2, 3, 17, 30), out3.shape
    ref3 = jax.block_until_ready(_reference_nearest(x3, shape=(17, 30)))
    np.testing.assert_allclose(np.asarray(out3), np.asarray(ref3), rtol=1e-5, atol=1e-5)

    # 4) Exercise the H_out-chunked grid path (taken automatically for images
    #    too large for VMEM; forced small here to keep the test cheap).
    x4 = jax.random.normal(jax.random.PRNGKey(0), (1, 2, 64, 64), dtype=jnp.float32)
    out4 = jax.block_until_ready(
        interpolate(x4, mode='b', scale_factor=2, block_channels=1, block_h=32))
    assert out4.shape == (1, 2, 128, 128), out4.shape
    ref4 = jax.block_until_ready(_reference_bilinear(x4, scale_factor=2))
    np.testing.assert_allclose(np.asarray(out4), np.asarray(ref4), rtol=1e-4, atol=1e-4)

    print("KERNEL_OK")
</pallas_src>

<mosaic_0001>
module attributes {stable_mosaic.version = 11 : i64} {
  func.func @_resize_kernel(%arg0: i32, %arg1: i32, %arg2: memref<4x16x16xf32, #tpu.memory_space<vmem>>, %arg3: memref<32x16xf32, #tpu.memory_space<vmem>>, %arg4: memref<16x32xf32, #tpu.memory_space<vmem>>, %arg5: memref<4x32x32xf32, #tpu.memory_space<vmem>>) attributes {dimension_semantics = [#tpu.dimension_semantics<parallel>, #tpu.dimension_semantics<arbitrary>], iteration_bounds = array<i64: 2, 1>, scalar_prefetch = 0 : i64, scratch_operands = 0 : i64, tpu.core_type = #tpu.core_type<tc>, window_params = [{transform_indices = @transform_0, window_bounds = array<i64: 4, 16, 16>}, {transform_indices = @transform_1, window_bounds = array<i64: 32, 16>}, {pipeline_mode = #tpu.pipeline_mode<synchronous>, transform_indices = @transform_2, window_bounds = array<i64: 16, 32>}, {transform_indices = @transform_3, window_bounds = array<i64: 4, 32, 32>}]} {
    %c0 = arith.constant 0 : index
    %c0_0 = arith.constant 0 : index
    %c0_1 = arith.constant 0 : index
    %0 = vector.load %arg2[%c0, %c0_0, %c0_1] : memref<4x16x16xf32, #tpu.memory_space<vmem>>, vector<4x16x16xf32>
    %c0_2 = arith.constant 0 : index
    %c0_3 = arith.constant 0 : index
    %1 = vector.load %arg3[%c0_2, %c0_3] : memref<32x16xf32, #tpu.memory_space<vmem>>, vector<32x16xf32>
    %c0_4 = arith.constant 0 : index
    %c0_5 = arith.constant 0 : index
    %2 = vector.load %arg4[%c0_4, %c0_5] : memref<16x32xf32, #tpu.memory_space<vmem>>, vector<16x32xf32>
    %3 = vector.shape_cast %1 : vector<32x16xf32> to vector<1x32x16xf32>
    %4 = vector.broadcast %3 : vector<1x32x16xf32> to vector<4x32x16xf32>
    "tpu.trace_start"() <{level = 10 : i32, message = "boh,bhw->bow"}> : () -> ()
    %cst = arith.constant dense<0.000000e+00> : vector<4x32x16xf32>
    %5 = tpu.matmul %4, %0, %cst {dimension_numbers = #tpu.dot_dimension_numbers<[2], [1], [1], [2], [0, 0, 0, 1, 1, 2], [0], [0]>} : vector<4x32x16xf32>, vector<4x16x16xf32>, vector<4x32x16xf32> -> vector<4x32x16xf32>
    "tpu.trace_stop"() : () -> ()
    %6 = vector.shape_cast %5 : vector<4x32x16xf32> to vector<128x16xf32>
    %cst_6 = arith.constant dense<0.000000e+00> : vector<128x32xf32>
    %7 = tpu.matmul %6, %2, %cst_6 {dimension_numbers = #tpu.dot_dimension_numbers<[1], [0], [0], [1], [0, 0, 1, 1], [], []>} : vector<128x16xf32>, vector<16x32xf32>, vector<128x32xf32> -> vector<128x32xf32>
    %8 = vector.shape_cast %7 : vector<128x32xf32> to vector<4x32x32xf32>
    %c0_7 = arith.constant 0 : index
    %c0_8 = arith.constant 0 : index
    %c0_9 = arith.constant 0 : index
    %9 = vector.load %arg5[%c0_7, %c0_8, %c0_9] : memref<4x32x32xf32, #tpu.memory_space<vmem>>, vector<4x32x32xf32>
    tpu.vector_store %arg5[%c0_7, %c0_8, %c0_9], %8 {strides = array<i32>} : memref<4x32x32xf32, #tpu.memory_space<vmem>>, vector<4x32x32xf32>,
    return
  }
  func.func @transform_0(%arg0: i32, %arg1: i32) -> (i32, i32, i32) {
    %c0_i32 = arith.constant 0 : i32
    %c0_i32_0 = arith.constant 0 : i32
    %c0_i32_1 = arith.constant 0 : i32
    return %arg0, %c0_i32, %c0_i32_0 : i32, i32, i32
  }
  func.func @transform_1(%arg0: i32, %arg1: i32) -> (i32, i32) {
    %c0_i32 = arith.constant 0 : i32
    %c0_i32_0 = arith.constant 0 : i32
    return %arg1, %c0_i32 : i32, i32
  }
  func.func @transform_2(%arg0: i32, %arg1: i32) -> (i32, i32) {
    %c0_i32 = arith.constant 0 : i32
    %c0_i32_0 = arith.constant 0 : i32
    %c0_i32_1 = arith.constant 0 : i32
    return %c0_i32, %c0_i32_0 : i32, i32
  }
  func.func @transform_3(%arg0: i32, %arg1: i32) -> (i32, i32, i32) {
    %c0_i32 = arith.constant 0 : i32
    %c0_i32_0 = arith.constant 0 : i32
    return %arg0, %arg1, %c0_i32 : i32, i32, i32
  }
}

</mosaic_0001>

<bundles_post_ra>
// kernel: interpolate.1
= control target key start
LH: loop header
LB: loop body
LE: loop exit
PB: predicated region body
PF: predicated region fallthrough
CT: control target
= control target key end

     0   :  { %8 = vsyncpa [#allocation3], 0  ;;  %s1754_s0 = inlined_call_operand.hbm [shape: f32[8,16,16], index: 0, kind: input, shape index: {}]   ;;  %s1755_s1 = inlined_call_operand.hbm [shape: f32[32,16], index: 1, kind: input, shape index: {}]   ;;  %s1756_s2 = inlined_call_operand.hbm [shape: f32[16,32], index: 2, kind: input, shape index: {}]   ;;  %s1757_s3 = inlined_call_operand.hbm [shape: f32[8,32,32], index: 3, kind: output, shape index: {}]  }
   0x1   :  { %10 = vsyncpa [#allocation3 + $0x1], 0 }
   0x2   :  { %11 = vsyncpa [#allocation6], 0 }
   0x3   :  { %12 = vsyncpa [#allocation4], 0 }
   0x4   :  { %14 = vsyncpa [#allocation4 + $0x1], 0  ;;  %s1422_s12 = smov 0   ;;  %s1424_s13 = smov 0  }
   0x5   :  { %s1426_s14 = smov 0   ;;  %s1428_s15 = smov 0  }
   0x6   :  { %s1430_s16 = smov 0   ;;  %s1432_s17 = smov 0  }
   0x7 LB: > { %s944_s18 = sadd.s32 4294967295, %s1392_s17   ;;  %s945_s19 = sadd.s32 4294967294, %s1392_s17   ;;  %s1392_s17 = sphi %s1432_s17, %s20_s17   ;;  %s1388_s16 = sphi %s1430_s16, %s1779_s16   ;;  %s1384_s15 = sphi %s1428_s15, %s1778_s15   ;;  %s1380_s14 = sphi %s1426_s14, %s1777_s14   ;;  %s1376_s13 = sphi %s1424_s13, %s1776_s13   ;;  %s1372_s12 = sphi %s1422_s12, %s1775_s12  }
   0x8   : > { %p52_p0 = scmp.ne.s32.totalorder %s1376_s13, %s1372_s12  ;;  %p1456_p1 = scmp.eq.s32.totalorder %s944_s18, 0 }
   0x9   : > { %p1460_p2 = scmp.eq.s32.totalorder %s944_s18, 1  ;;  %p131_p3 = scmp.eq.s32.totalorder %s945_s19, 1 }
   0xa   : > { %s1762_s20 = scalar_select %p1456_p1, 1, 0 }
   0xb   : > { %p1466_p4 = por %p1456_p1, %p52_p0  ;;  %p946_p5 = scmp.ge.s32.totalorder %s1392_s17, 1 }
   0xc   : > { %p1471_p6 = por %p131_p3, %p52_p0  ;;  %p138_p7 = scmp.lt.s32.totalorder %s1392_s17, 3 }
   0xd   : > { %s1764_s22 = scalar_select %p1466_p4, 1, 0 }
   0xe   : > { %s1765_s23 = scalar_select %p1471_p6, 1, 0 }
   0xf   : > { %p1476_p8 = pnand %p946_p5, %p138_p7  ;;  %s1394_s25 = smov [#allocation5]  }
  0x10   : > { %s153_s26 = sshll.u32 %s1394_s25, 4  ;;  %s1395_s28 = smov [#allocation7]   ;;  %s1480_s26 = int_to_ptr.vmem [resolvable:$true] %s153_s26 }
  0x11   : > { %p1145_p9 = pneg %p1476_p8  ;;  %s166_s29 = sshll.u32 %s1395_s28, 4  ;;  %s1491_s29 = int_to_ptr.vmem [resolvable:$true] %s166_s29 }
  0x12   : > { %s1220_s5 = scalar_lea.hbm %s1755_s1, 512 }
  0x13   : > { %p1487_p11 = pnand %p1145_p9, %p1456_p1  ;;  %p1221_p12 = scmp.ne.s32.totalorder %s1755_s1, %s1220_s5 }
  0x14   : > { %p1227_p5 = scmp.lt.u32.totalorder %s1220_s5, %s1755_s1 }
  0x15   : > { %p1222_p13 = pneg %p1487_p11 }
  0x17   : > { %p1223_p0 = pnand %p1222_p13, %p1221_p12 }
  0x19   : > { %p1224_p3 = pneg %p1223_p0 }
  0x1b   : > { %p1229_p7 = pnand %p1227_p5, %p1224_p3 }
  0x1d   : > { %1232 = shalt.err (!%p1229_p7)
}
  0x1e   : > { %s1233_s10 = scalar_lea.vmem %s1480_s26, 512  ;;  %p1241_p1 = scmp.lt.s32.totalorder %s1480_s26, %s1480_s26 }
  0x1f   : > { %p1234_p9 = scmp.ne.s32.totalorder %s1480_s26, %s1233_s10  ;;  %p1242_p12 = scmp.lt.s32.totalorder %s1233_s10, %s1233_s10 }
  0x21   : > { %p1236_p10 = pnand %p1234_p9, %p1222_p13  ;;  %p1243_p0 = por %p1242_p12, %p1241_p1 }
  0x23   : > { %p1237_p6 = pneg %p1236_p10 }
  0x25   : > { %p1244_p4 = pnand %p1243_p0, %p1237_p6 }
  0x27   : > { %1247 = shalt.err (!%p1244_p4)
}
  0x28   : > { %s1396_s11 = smov 128   ;;  %s1397_s18 = smov 8  }
  0x29   : > { %1148 = dma.hbm_to_vmem [thread:$0]  (!%p1487_p11), %s1755_s1, 512, %s1480_s26, [#allocation6], %s1396_s11, %s1396_s11, %s1397_s18  }
  0x2a   : > { %s1248_s4 = scalar_lea.hbm %s1756_s2, 256 }
  0x2b   : > { %p1249_p1 = scmp.ne.s32.totalorder %s1756_s2, %s1248_s4  ;;  %p1255_p10 = scmp.lt.u32.totalorder %s1248_s4, %s1756_s2 }
  0x2d   : > { %p1251_p4 = pnand %p1249_p1, %p1222_p13 }
  0x2f   : > { %p1252_p6 = pneg %p1251_p4 }
  0x31   : > { %p1257_p3 = pnand %p1255_p10, %p1252_p6 }
  0x33   : > { %1260 = shalt.err (!%p1257_p3)
}
  0x34   : > { %s1261_s26 = scalar_lea.vmem %s1491_s29, 256  ;;  %p1269_p12 = scmp.lt.s32.totalorder %s1491_s29, %s1491_s29 }
  0x35   : > { %p1262_p5 = scmp.ne.s32.totalorder %s1491_s29, %s1261_s26  ;;  %p1270_p0 = scmp.lt.s32.totalorder %s1261_s26, %s1261_s26 }
  0x37   : > { %p1264_p7 = pnand %p1262_p5, %p1222_p13  ;;  %p1271_p1 = por %p1270_p0, %p1269_p12 }
  0x39   : > { %p1265_p9 = pneg %p1264_p7 }
  0x3b   : > { %p1272_p4 = pnand %p1271_p1, %p1265_p9 }
  0x3d   : > { %1275 = shalt.err (!%p1272_p4)
}
  0x3e   : > { %1151 = dma.hbm_to_vmem [thread:$0]  (!%p1487_p11), %s1756_s2, 256, %s1491_s29, [#allocation6], %s1396_s11, %s1396_s11, %s1397_s18  }
  0x3f   : > { %s32_s27 = sadd.s32 1, %s1388_s16  ;;  %s39_s19 = sadd.s32 1, %s1380_s14 }
  0x40   : > { %p34_p13 = scmp.ge.s32.totalorder %s32_s27, 2  ;;  %p46_p6 = scmp.ne.s32.totalorder %s1380_s14, %s1376_s13 }
  0x41   : > { %p47_p10 = scmp.eq.s32.totalorder %s1392_s17, 0  ;;  %p1162_p3 = scmp.lt.s32.totalorder %s1392_s17, 2 }
  0x42   : > { %s1781_s27 = smov (%p34_p13, %s32_s27), 0  ;;  %p1561_p7 = por %p1460_p2, %p46_p6 }
  0x43   : > { %p48_p5 = por %p47_p10, %p46_p6  ;;  %s36_s28 = ssub.s32 %s1388_s16, %s1781_s27 }
  0x44   : > { %s1768_s25 = scalar_select %p1561_p7, 1, 0 }
  0x45   : > { %s180_s30 = sand.u32 1, %s1380_s14   ;;  %p37_p9 = scmp.eq.s32.totalorder %s36_s28, 0 }
  0x46   : > { %s950_s29 = sshll.u32 %s180_s30, 6  ;;  %s998_s4 = sshll.u32 %s1388_s16, 10 }
  0x47   : > { %s1570_s5 = scalar_select %p37_p9, %s1380_s14, %s39_s19  }
  0x48   : > { %s1575_s8 = scalar_lea.hbm %s1754_s0, %s998_s4  ;;  %s184_s21 = scalar_lea.vmem [#allocation2], %s950_s29 }
  0x49   : > { %s192_s26 = sshll.u32 %s184_s21, 4  ;;  %p1579_p2 = pnand %p1162_p3, %p48_p5  ;;  %s1583_s26 = int_to_ptr.vmem [resolvable:$true] %s192_s26 }
  0x4a   : > { %s1585_s10 = scalar_lea.sflag [#allocation3], %s180_s30  ;;  %s1276_s19 = scalar_lea.hbm %s1575_s8, 1024 }
  0x4b   : > { %p1277_p11 = scmp.ne.s32.totalorder %s1575_s8, %s1276_s19  ;;  %p1278_p12 = pneg %p1579_p2 }
  0x4c   : > { %s1281_s4 = scalar_lea.hbm %s1754_s0, 2048  ;;  %p1282_p4 = scmp.lt.u32.totalorder %s1575_s8, %s1754_s0 }
  0x4d   : > { %p1279_p0 = pnand %p1278_p12, %p1277_p11  ;;  %p1283_p13 = scmp.lt.u32.totalorder %s1281_s4, %s1276_s19 }
  0x4e   : > { %p1285_p10 = scmp.lt.u32.totalorder %s1276_s19, %s1575_s8 }
  0x4f   : > { %p1280_p1 = pneg %p1279_p0  ;;  %p1284_p6 = por %p1283_p13, %p1282_p4 }
  0x51   : > { %p1286_p3 = por %p1285_p10, %p1284_p6 }
  0x53   : > { %p1287_p5 = pnand %p1286_p3, %p1280_p1 }
  0x55   : > { %1290 = shalt.err (!%p1287_p5)
}
  0x56   : > { %s1291_s30 = scalar_lea.vmem %s1583_s26, 1024  ;;  %s1398_s21 = smov [#allocation2]  }
  0x57   : > { %p1292_p9 = scmp.ne.s32.totalorder %s1583_s26, %s1291_s30  ;;  %s1296_s28 = sshll.u32 %s1398_s21, 4  ;;  %s1297_s28 = int_to_ptr.vmem [resolvable:$false] %s1296_s28 }
  0x58   : > { %s1298_s29 = scalar_lea.vmem %s1297_s28, 2048  ;;  %p1299_p7 = scmp.lt.s32.totalorder %s1583_s26, %s1297_s28 }
  0x59   : > { %p1294_p11 = pnand %p1292_p9, %p1278_p12  ;;  %p1300_p4 = scmp.lt.s32.totalorder %s1298_s29, %s1291_s30 }
  0x5b   : > { %p1295_p0 = pneg %p1294_p11  ;;  %p1301_p13 = por %p1300_p4, %p1299_p7 }
  0x5d   : > { %p1302_p6 = pnand %p1301_p13, %p1295_p0 }
  0x5f   : > { %1305 = shalt.err (!%p1302_p6)
}
  0x60   : > { %1155 = dma.hbm_to_vmem [thread:$0]  (!%p1579_p2), %s1575_s8, 1024, %s1583_s26, %s1585_s10, %s1396_s11, %s1396_s11, %s1397_s18  }
  0x61   : > { %204 = sbr.rel (%p1476_p8) target bundleno = 577 (0x241), region = 32  ;;  %s1619_s19 = sand.u32 (!%p1476_p8), 1, %s1376_s13  }
  0x62   : > { %s955_s4 = sshll.u32 (!%p1476_p8), %s1619_s19, 6  ;;  %s207_s6 = scalar_lea.sflag (!%p1476_p8), [#allocation3], %s1619_s19 }
  0x63   : > { %s210_s7 = scalar_lea.vmem (!%p1476_p8), [#allocation2], %s955_s4  ;;  %p1770_p7 = scmp.ne.s32.totalorder (!%p1476_p8), %s1764_s22, 0 }
  0x68   : > { %1359 = dma.done.wait (%p1770_p7), %s207_s6, 1024  }
  0x69   : > { %1361 = vsyncadd (%p1770_p7), %s207_s6, 4294966272  ;;  %p1771_p12 = scmp.ne.s32.totalorder %s1762_s20, 0 }
  0x6b   : > { %1363 = dma.done.wait (%p1771_p12), [#allocation6], 768  }
  0x6c   : > { %1365 = vsyncadd (%p1771_p12), [#allocation6], 4294966528  ;;  %vm259_vm0 = vcmask 130048   ;;  %v245_v0 = vld [vmem:[%s210_s7] sm:$0xff]  ;;  %v246_v1 = vld [vmem:[%s210_s7 + $0x8] sm:$0xff]  ;;  %s958_s20 = sshll.u32 %s1619_s19, 7 }
  0x6d   : > { %v253_v2 = vld [vmem:[#allocation5] sm:$0xff]  ;;  %v1111_v3 = vpack.c.bf16 %v246_v1, %v245_v0  ;;  %v250_v5 = vld [vmem:[%s210_s7 + $0x28] sm:$0xff]  ;;  %v247_v7 = vld [vmem:[%s210_s7 + $0x10] sm:$0xff]  ;;  %vm805_vm1 = vcmask 261120   ;;  %s1664_s22 = scalar_lea.vmem [#allocation8], %s958_s20  ;;  %s1000_s24 = sshll.u32 %s1384_s15, 11 }
  0x6e   : > { %1047 = vmatprep.mubr.msk.f32.mxu0 %vm259_vm0, %v253_v2  ;;  %v249_v4 = vld [vmem:[%s210_s7 + $0x20] sm:$0xff]  ;;  %1057 = vmatprep.mubr.msk.f32.mxu1 %vm259_vm0, %v253_v2  ;;  %v248_v8 = vld [vmem:[%s210_s7 + $0x18] sm:$0xff]  ;;  %v251_v9 = vld [vmem:[%s210_s7 + $0x30] sm:$0xff]  ;;  %s839_s11 = sshll.u32 %s1664_s22, 4  ;;  %s1699_s26 = scalar_lea.hbm %s1757_s3, %s1000_s24  ;;  %s1701_s11 = int_to_ptr.vmem [resolvable:$true] %s839_s11 }
  0x6f   : > { %v1119_v6 = vpack.c.bf16 %v250_v5, %v249_v4  ;;  %1112 = vmatprep.subr.bf16.mxu0 %v1111_v3  ;;  %v252_v10 = vld [vmem:[%s210_s7 + $0x38] sm:$0xff]  ;;  %v254_v11 = vld [vmem:[#allocation5 + $0x8] sm:$0xff]  ;;  %v1115_v12 = vpack.c.bf16 %v248_v8, %v247_v7  ;;  %v257_v13 = vld [vmem:[#allocation7] sm:$0xff]  ;;  %s823_s15 = scalar_lea.sflag [#allocation4], %s1619_s19  ;;  %s1306_s9 = scalar_lea.vmem %s1701_s11, 2048 }
  0x70   : > { %1114 = vmatpush3.bf16.msra.mxu0 %v1111_v3  ;;  %v258_v14 = vld [vmem:[#allocation7 + $0x8] sm:$0xff]  ;;  %v255_v15 = vld [vmem:[#allocation5 + $0x10] sm:$0xff]  ;;  %v1123_v16 = vpack.c.bf16 %v252_v10, %v251_v9  ;;  %v256_v18 = vld [vmem:[#allocation5 + $0x18] sm:$0xff]  ;;  %p1307_p8 = scmp.ne.s32.totalorder %s1701_s11, %s1306_s9  ;;  %p1772_p2 = scmp.ne.s32.totalorder %s1768_s25, 0 }
  0x71   : > { %1120 = vmatprep.subr.bf16.mxu0 %v1119_v6  ;;  %v1127_v17 = vpack.c.bf16 %v258_v14, %v257_v13  ;;  %1116 = vmatprep.subr.bf16.mxu1 %v1115_v12  ;;  %s1399_s10 = smov [#allocation8]  }
  0x72   : > { %1118 = vmatpush3.bf16.msra.mxu1 %v1115_v12  ;;  %p1308_p1 = pnand %p1307_p8, %p1772_p2  ;;  %s1310_s30 = sshll.u32 %s1399_s10, 4  ;;  %s1311_s30 = int_to_ptr.vmem [resolvable:$false] %s1310_s30 }
  0x73   : > { %1048 = vmatmul.mubr.msk.f32.vlgmr.msra.gmra.mrb[0].mxu0 %vm259_vm0, %v254_v11  ;;  %1124 = vmatprep.subr.bf16.mxu1 %v1123_v16  ;;  %s1312_s21 = scalar_lea.vmem %s1311_s30, 4096  ;;  %p1313_p3 = scmp.lt.s32.totalorder %s1701_s11, %s1311_s30 }
  0x74   : > { %1122 = vmatpush3.bf16.msra.mxu0 %v1119_v6  ;;  %1050 = vmatprep.mubr.msk.f32.mxu0 %vm259_vm0, %v255_v15  ;;  %p1309_p10 = pneg %p1308_p1  ;;  %p1314_p5 = scmp.lt.s32.totalorder %s1312_s21, %s1306_s9 }
  0x75   : > { %1128 = vmatprep.subr.bf16.mxu0 %v1127_v17  ;;  %1058 = vmatmul.mubr.msk.f32.vlgmr.msra.gmra.mrb[0].mxu1 %vm259_vm0, %v254_v11 }
  0x76   : > { %1126 = vmatpush3.bf16.msra.mxu1 %v1123_v16  ;;  %1060 = vmatprep.mubr.msk.f32.mxu1 %vm259_vm0, %v255_v15  ;;  %p1315_p9 = por %p1314_p5, %p1313_p3 }
  0x77   : > { %1051 = vmatmul.mubr.msk.f32.gmra.mrb[2].mxu0 %vm259_vm0, %v256_v18  ;;  %1131 = vmatprep.subr.bf16.mxu1 %v1127_v17 }
  0x78   : > { %1067 = vmatprep.mubr.msk.f32.mxu0 %vm259_vm0, %v253_v2  ;;  %p1316_p11 = pnand %p1315_p9, %p1309_p10 }
  0x79   : > { %1061 = vmatmul.mubr.msk.f32.gmra.mrb[2].mxu1 %vm259_vm0, %v256_v18 }
  0x7a   : > { %1077 = vmatprep.mubr.msk.f32.mxu1 %vm259_vm0, %v253_v2 }
  0x7b   : > { %1068 = vmatmul.mubr.msk.f32.vlgmr.msra.gmra.mrb[4].mxu0 %vm259_vm0, %v254_v11 }
  0x7c   : > { %1070 = vmatprep.mubr.msk.f32.mxu0 %vm259_vm0, %v255_v15  ;;  %1130 = vmatpush3.bf16.msra.mxu0 %v1127_v17 }
  0x7d   : > { %1078 = vmatmul.mubr.msk.f32.vlgmr.msra.gmra.mrb[4].mxu1 %vm259_vm0, %v254_v11 }
  0x7e   : > { %1080 = vmatprep.mubr.msk.f32.mxu1 %vm259_vm0, %v255_v15  ;;  %1132 = vmatpush3.bf16.msra.mxu1 %v1127_v17 }
  0x7f   : > { %1071 = vmatmul.mubr.msk.f32.gmra.mrb[6].mxu0 %vm259_vm0, %v256_v18 }
  0x81   : > { %1081 = vmatmul.mubr.msk.f32.gmra.mrb[6].mxu1 %vm259_vm0, %v256_v18 }
 0x146   : > { %v1049_v19 = vpop.f32.mrb[0].mxu0 }
 0x147   : > { %v338_v20 = vpop.f32.mrb[1].mxu0 }
 0x148   : > { %1087 = vmatprep.mubr.msk.f32.mxu0 %vm259_vm0, %v338_v20  ;;  %v1059_v21 = vpop.f32.mrb[0].mxu1 }
 0x149   : > { %1088 = vmatmul.mubr.msk.f32.vlgmr.msra.gmra.mrb[8].mxu0 %vm259_vm0, %v1049_v19  ;;  %v423_v23 = vpop.f32.mrb[1].mxu1 }
 0x14a   : > { %v1052_v22 = vpop.f32.mrb[2].mxu0 }
 0x14b   : > { %v348_v24 = vpop.f32.mrb[3].mxu0 }
 0x14c   : > { %1090 = vmatprep.mubr.msk.f32.mxu0 %vm259_vm0, %v348_v24  ;;  %v1062_v25 = vpop.f32.mrb[2].mxu1 }
 0x14d   : > { %1091 = vmatmul.mubr.msk.f32.gmra.mrb[10].mxu0 %vm259_vm0, %v1052_v22  ;;  %v433_v27 = vpop.f32.mrb[3].mxu1 }
 0x14e   : > { %v1069_v26 = vpop.f32.mrb[4].mxu0  ;;  %1093 = vmatprep.mubr.msk.f32.mxu0 %vm259_vm0, %v423_v23 }
 0x14f   : > { %v508_v28 = vpop.f32.mrb[5].mxu0 }
 0x150   : > { %1099 = vmatprep.mubr.msk.f32.mxu1 %vm259_vm0, %v508_v28  ;;  %v1079_v29 = vpop.f32.mrb[4].mxu1 }
 0x151   : > { %1094 = vmatmul.mubr.msk.f32.gmra.mrb[12].mxu0 %vm259_vm0, %v1059_v21  ;;  %1100 = vmatmul.mubr.msk.f32.vlgmr.msra.gmra.mrb[8].mxu1 %vm259_vm0, %v1069_v26  ;;  %v593_v31 = vpop.f32.mrb[5].mxu1 }
 0x152   : > { %v1072_v30 = vpop.f32.mrb[6].mxu0  ;;  %1096 = vmatprep.mubr.msk.f32.mxu0 %vm259_vm0, %v433_v27 }
 0x153   : > { %v518_v32 = vpop.f32.mrb[7].mxu0 }
 0x154   : > { %1102 = vmatprep.mubr.msk.f32.mxu1 %vm259_vm0, %v518_v32  ;;  %v1082_v33 = vpop.f32.mrb[6].mxu1 }
 0x155   : > { %1097 = vmatmul.mubr.msk.f32.gmra.mrb[14].mxu0 %vm259_vm0, %v1062_v25  ;;  %1103 = vmatmul.mubr.msk.f32.gmra.mrb[10].mxu1 %vm259_vm0, %v1072_v30  ;;  %v603_v34 = vpop.f32.mrb[7].mxu1 }
 0x156   : > { %1105 = vmatprep.mubr.msk.f32.mxu1 %vm259_vm0, %v593_v31 }
 0x159   : > { %1106 = vmatmul.mubr.msk.f32.gmra.mrb[12].mxu1 %vm259_vm0, %v1079_v29 }
 0x15a   : > { %1108 = vmatprep.mubr.msk.f32.mxu1 %vm259_vm0, %v603_v34 }
 0x15d   : > { %1109 = vmatmul.mubr.msk.f32.gmra.mrb[14].mxu1 %vm259_vm0, %v1082_v33 }
 0x21c   : > { %v1089_v35 = vpop.f32.mrb[8].mxu0 }
 0x21d   : > { %807 = vst.msk [vmem:[%s1664_s22 + $0x8] sm:$0xff] %vm805_vm1, %v1089_v35  ;;  %v726_v36 = vpop.f32.mrb[9].mxu0 }
 0x21e   : > { %806 = vst.msk [vmem:[%s1664_s22] sm:$0xff] %vm805_vm1, %v726_v36 }
 0x220   : > { %v1092_v37 = vpop.f32.mrb[10].mxu0 }
 0x221   : > { %809 = vst.msk [vmem:[%s1664_s22 + $0x18] sm:$0xff] %vm805_vm1, %v1092_v37  ;;  %v736_v38 = vpop.f32.mrb[11].mxu0 }
 0x222   : > { %808 = vst.msk [vmem:[%s1664_s22 + $0x10] sm:$0xff] %vm805_vm1, %v736_v38 }
 0x224   : > { %v1095_v39 = vpop.f32.mrb[12].mxu0  ;;  %v1101_v40 = vpop.f32.mrb[8].mxu1 }
 0x225   : > { %811 = vst.msk [vmem:[%s1664_s22 + $0x28] sm:$0xff] %vm805_vm1, %v1095_v39  ;;  %815 = vst.msk [vmem:[%s1664_s22 + $0x48] sm:$0xff] %vm805_vm1, %v1101_v40  ;;  %v746_v41 = vpop.f32.mrb[13].mxu0  ;;  %v766_v42 = vpop.f32.mrb[9].mxu1 }
 0x226   : > { %810 = vst.msk [vmem:[%s1664_s22 + $0x20] sm:$0xff] %vm805_vm1, %v746_v41  ;;  %814 = vst.msk [vmem:[%s1664_s22 + $0x40] sm:$0xff] %vm805_vm1, %v766_v42 }
 0x228   : > { %v1098_v43 = vpop.f32.mrb[14].mxu0  ;;  %v1104_v44 = vpop.f32.mrb[10].mxu1 }
 0x229   : > { %813 = vst.msk [vmem:[%s1664_s22 + $0x38] sm:$0xff] %vm805_vm1, %v1098_v43  ;;  %817 = vst.msk [vmem:[%s1664_s22 + $0x58] sm:$0xff] %vm805_vm1, %v1104_v44  ;;  %v756_v45 = vpop.f32.mrb[15].mxu0  ;;  %v776_v46 = vpop.f32.mrb[11].mxu1 }
 0x22a   : > { %812 = vst.msk [vmem:[%s1664_s22 + $0x30] sm:$0xff] %vm805_vm1, %v756_v45  ;;  %816 = vst.msk [vmem:[%s1664_s22 + $0x50] sm:$0xff] %vm805_vm1, %v776_v46 }
 0x22c   : > { %v1107_v47 = vpop.f32.mrb[12].mxu1 }
 0x22d   : > { %819 = vst.msk [vmem:[%s1664_s22 + $0x68] sm:$0xff] %vm805_vm1, %v1107_v47  ;;  %v786_v48 = vpop.f32.mrb[13].mxu1 }
 0x22e   : > { %818 = vst.msk [vmem:[%s1664_s22 + $0x60] sm:$0xff] %vm805_vm1, %v786_v48 }
 0x230   : > { %v1110_v49 = vpop.f32.mrb[14].mxu1 }
 0x231   : > { %821 = vst.msk [vmem:[%s1664_s22 + $0x78] sm:$0xff] %vm805_vm1, %v1110_v49  ;;  %v796_v50 = vpop.f32.mrb[15].mxu1 }
 0x232   : > { %820 = vst.msk [vmem:[%s1664_s22 + $0x70] sm:$0xff] %vm805_vm1, %v796_v50 }
 0x233   : > { %1319 = shalt.err (!%p1316_p11)
}
 0x234   : > { %s1320_s28 = scalar_lea.hbm %s1699_s26, 2048  ;;  %s1324_s6 = scalar_lea.hbm %s1757_s3, 4096 }
 0x235   : > { %p1321_p0 = scmp.ne.s32.totalorder %s1699_s26, %s1320_s28  ;;  %p1325_p6 = scmp.lt.u32.totalorder %s1699_s26, %s1757_s3 }
 0x236   : > { %p1326_p7 = scmp.lt.u32.totalorder %s1324_s6, %s1320_s28  ;;  %p1328_p8 = scmp.lt.u32.totalorder %s1320_s28, %s1699_s26 }
 0x237   : > { %p1322_p4 = pnand %p1321_p0, %p1772_p2 }
 0x238   : > { %p1327_p12 = por %p1326_p7, %p1325_p6 }
 0x239   : > { %p1323_p13 = pneg %p1322_p4 }
 0x23a   : > { %p1329_p1 = por %p1328_p8, %p1327_p12 }
 0x23c   : > { %p1330_p10 = pnand %p1329_p1, %p1323_p13 }
 0x23e   : > { %1333 = shalt.err (!%p1330_p10)
}
 0x23f   : > { %s1400_s22 = smov 128   ;;  %s1401_s24 = smov 8  }
 0x240   : > { %1143 = dma.vmem_to_hbm [thread:$0]  (%p1772_p2), %s1701_s11, 2048, %s1699_s26, %s823_s15, %s1400_s22, %s1400_s22, %s1401_s24  }
 0x241 PF: > { %s854_s18 = sand.u32 1, %s1372_s12   ;;  %p1773_p3 = scmp.ne.s32.totalorder %s1765_s23, 0 }
 0x242   : > { %p1774_p5 = scmp.ge.s32.totalorder %s1392_s17, 2  ;;  %s855_s8 = scalar_lea.sflag [#allocation4], %s854_s18 }
 0x244   : > { %p1157_p9 = pnand %p1774_p5, %p1773_p3 }
 0x246   : > { %1367 = dma.done.wait (!%p1157_p9), %s855_s8, 2048  }
 0x247   : > { %1369 = vsyncadd (!%p1157_p9), %s855_s8, 4294965248  ;;  %s20_s17 = sadd.s32 1, %s1392_s17   ;;  %s1775_s12 = smov %s1376_s13 }
 0x248   : > { %p17_p11 = scmp.ge.s32.totalorder %s20_s17, 4   ;;  %s1776_s13 = smov %s1380_s14 }
 0x249   : > { %s1777_s14 = smov %s1570_s5  ;;  %s1778_s15 = smov %s1388_s16 }
 0x24a   : > { %s1779_s16 = smov %s1781_s27  ;;  %19 = sbr.rel (!%p17_p11) target bundleno = 7 (0x7), region = 86 }
 0x251   :  { %860 = vsyncpa [#allocation3], 1 }
 0x252   :  { %862 = vsyncpa [#allocation3 + $0x1], 1 }
 0x253   :  { %863 = vsyncpa [#allocation6], 1 }
 0x254   :  { %864 = vsyncpa [#allocation4], 1 }
 0x255   :  { %866 = vsyncpa [#allocation4 + $0x1], 1 }

</bundles_post_ra>
